<compile_context>
chip_gen: v6e
topology: v6e:2x2x1
jax: 0.10.0
libtpu: 0.0.40
codegen_flags: <defaults>
</compile_context>

<pallas_src>
import functools

import jax
import jax.numpy as jnp
from jax import lax
from jax.experimental import pallas as pl
from jax.experimental.pallas import tpu as pltpu


# ----------------------------- shared helper (traced inside kernels) --------
def _layernorm(x, g, b, eps=1e-5):
    mu = jnp.mean(x, axis=-1, keepdims=True)
    xc = x - mu
    var = jnp.mean(xc * xc, axis=-1, keepdims=True)
    return xc * lax.rsqrt(var + eps) * g + b


# ----------------------------- patch embed + cls + pos + ln_pre -------------
def _embed_kernel(s_pad, p_ref, w_ref, cls_ref, pos_ref, g_ref, b_ref, o_ref):
    # p_ref: (1, P, Kp) bf16, w_ref: (Kp, D) bf16, cls/pos/g/b: f32
    P = p_ref.shape[1]
    D = o_ref.shape[2]
    pe = jnp.dot(p_ref[0], w_ref[...], preferred_element_type=jnp.float32)  # (P, D)
    g = g_ref[...]
    b = b_ref[...]
    row0 = cls_ref[...] + pos_ref[0:1, :]            # (1, D)
    rows = pe + pos_ref[1:, :]                       # (P, D)
    o_ref[0, 0:1, :] = _layernorm(row0, g, b)
    o_ref[0, 1:P + 1, :] = _layernorm(rows, g, b)
    if s_pad > P + 1:                                # zero (finite) pad rows
        o_ref[0, P + 1:, :] = jnp.zeros((s_pad - P - 1, D), jnp.float32)


def embed(patches, w_pe, cls_emb, pos_emb, ln_pre_g, ln_pre_b, s_pad):
    B, P, Kp = patches.shape
    D = w_pe.shape[1]
    S_real = P + 1
    kern = functools.partial(_embed_kernel, s_pad)
    return pl.pallas_call(
        kern,
        out_shape=jax.ShapeDtypeStruct((B, s_pad, D), jnp.float32),
        grid=(B,),
        in_specs=[
            pl.BlockSpec((1, P, Kp), lambda b: (b, 0, 0)),
            pl.BlockSpec((Kp, D), lambda b: (0, 0)),        # constant -> DMA'd once
            pl.BlockSpec((1, D), lambda b: (0, 0)),
            pl.BlockSpec((S_real, D), lambda b: (0, 0)),
            pl.BlockSpec((1, D), lambda b: (0, 0)),
            pl.BlockSpec((1, D), lambda b: (0, 0)),
        ],
        out_specs=pl.BlockSpec((1, s_pad, D), lambda b: (b, 0, 0)),
        compiler_params=pltpu.CompilerParams(dimension_semantics=("parallel",)),
    )(patches, w_pe, cls_emb, pos_emb, ln_pre_g, ln_pre_b)


# ----------------------------- whole transformer stack in one pallas_call ---
def _stack_kernel(heads, s_real, x_ref, vec_ref, wqkv, wo, wfc, wpr, o_ref, x_sc):
    l = pl.program_id(0)
    B, S, D = x_ref.shape
    hd = D // heads
    bf16 = jnp.bfloat16

    # Initialize the carried activation once (B folded into the block -> the
    # per-layer weights below are streamed exactly once per layer).
    @pl.when(l == 0)
    def _():
        x_sc[...] = x_ref[...].reshape(B * S, D)

    x = x_sc[...]                                   # (B*S, D) f32

    # Packed per-layer vectors: ln1_g|ln1_b|bqkv|bo|ln2_g|ln2_b|bfc|bpr (13*D).
    vec = vec_ref[0]                                # (1, 13*D)
    ln1_g = vec[:, 0 * D:1 * D]
    ln1_b = vec[:, 1 * D:2 * D]
    bqkv = vec[:, 2 * D:5 * D]
    bo = vec[:, 5 * D:6 * D]
    ln2_g = vec[:, 6 * D:7 * D]
    ln2_b = vec[:, 7 * D:8 * D]
    bfc = vec[:, 8 * D:12 * D]
    bpr = vec[:, 12 * D:13 * D]

    # --- multi-head self attention on ln_1(x), fused QKV matmul over B*S ----
    h = _layernorm(x, ln1_g, ln1_b).astype(bf16)
    qkv = jnp.dot(h, wqkv[0], preferred_element_type=jnp.float32) + bqkv  # (B*S, 3D)
    # 1/sqrt(hd) is folded into the Q columns of wqkv at init (no VPU multiply).
    q3 = qkv[:, :D].astype(bf16).reshape(B, S, D)
    k3 = qkv[:, D:2 * D].astype(bf16).reshape(B, S, D)
    v3 = qkv[:, 2 * D:].astype(bf16).reshape(B, S, D)

    # Additive key-padding bias (padded tokens must not be attended to).
    if S > s_real:
        key_idx = lax.broadcasted_iota(jnp.int32, (1, 1, S), 2)
        key_bias = jnp.where(key_idx >= s_real,
                             jnp.float32(-1e30), jnp.float32(0.0))
    else:
        key_bias = None

    head_outs = []
    for hh in range(heads):                         # static head slices
        lo = hh * hd
        qh = q3[:, :, lo:lo + hd]
        kh = k3[:, :, lo:lo + hd]
        vh = v3[:, :, lo:lo + hd]
        s = jnp.einsum("bqd,bkd->bqk", qh, kh,
                       preferred_element_type=jnp.float32)       # (B, S, S)
        if key_bias is not None:
            s = s + key_bias
        s = s - jnp.max(s, axis=-1, keepdims=True)
        p = jnp.exp(s)
        p = p * pl.reciprocal(jnp.sum(p, axis=-1, keepdims=True), approx=True)
        head_outs.append(jnp.einsum("bqk,bkd->bqd", p.astype(bf16), vh,
                                    preferred_element_type=jnp.float32))
    attn = jnp.concatenate(head_outs, axis=-1).reshape(B * S, D)  # (B*S, D)

    attn_out = jnp.dot(attn.astype(bf16), wo[0],
                       preferred_element_type=jnp.float32) + bo
    x = x + attn_out

    # --- MLP on ln_2(x) with QuickGELU --------------------------------------
    h2 = _layernorm(x, ln2_g, ln2_b).astype(bf16)
    a = jnp.dot(h2, wfc[0], preferred_element_type=jnp.float32) + bfc
    gact = a * jax.nn.sigmoid(1.702 * a)
    mlp = jnp.dot(gact.astype(bf16), wpr[0],
                  preferred_element_type=jnp.float32) + bpr
    new_x = x + mlp

    x_sc[...] = new_x

    # Only the cls token is consumed downstream -> emit (B, D) once.
    @pl.when(l == pl.num_programs(0) - 1)
    def _():
        o_ref[...] = new_x.reshape(B, S, D)[:, 0, :]


def transformer_stack(x, stack, heads, s_real):
    B, S, D = x.shape
    L = stack["wqkv"].shape[0]
    H4 = 4 * D
    kern = functools.partial(_stack_kernel, heads, s_real)

    def per_layer(shape):
        return pl.BlockSpec((1,) + shape, lambda l: (l,) + (0,) * len(shape))

    return pl.pallas_call(
        kern,
        out_shape=jax.ShapeDtypeStruct((B, D), jnp.float32),
        grid=(L,),
        in_specs=[
            pl.BlockSpec((B, S, D), lambda l: (0, 0, 0)),     # activation, DMA'd once
            per_layer((1, 13 * D)),                           # packed ln/bias vectors
            per_layer((D, 3 * D)),                            # fused wqkv (bf16)
            per_layer((D, D)),                                # wo (bf16)
            per_layer((D, H4)),                               # wfc (bf16)
            per_layer((H4, D)),                               # wpr (bf16)
        ],
        out_specs=pl.BlockSpec((B, D), lambda l: (0, 0)),
        scratch_shapes=[pltpu.VMEM((B * S, D), jnp.float32)],
        compiler_params=pltpu.CompilerParams(
            dimension_semantics=("arbitrary",),
            vmem_limit_bytes=48 * 1024 * 1024),               # fits v7x's 64 MiB VMEM
    )(x, stack["vecs"], stack["wqkv"], stack["wo"], stack["wfc"], stack["wpr"])


# ----------------------------- ln_post + projection (feature branch) --------
def _head_kernel(x_ref, g_ref, b_ref, w_ref, o_ref):
    h = _layernorm(x_ref[...], g_ref[...], b_ref[...])
    o_ref[...] = jnp.dot(h.astype(jnp.bfloat16), w_ref[...],
                         preferred_element_type=jnp.float32)


def head_proj(cls_tok, g, b, proj):
    B, D = cls_tok.shape
    O = proj.shape[1]
    return pl.pallas_call(
        _head_kernel,
        out_shape=jax.ShapeDtypeStruct((B, O), jnp.float32),
        grid=(1,),
        in_specs=[
            pl.BlockSpec((B, D), lambda i: (0, 0)),
            pl.BlockSpec((1, D), lambda i: (0, 0)),
            pl.BlockSpec((1, D), lambda i: (0, 0)),
            pl.BlockSpec((D, O), lambda i: (0, 0)),
        ],
        out_specs=pl.BlockSpec((B, O), lambda i: (0, 0)),
    )(cls_tok, g, b, proj)


# ------------------- fused ln_post + projection + CLIP logits (logit branch) -
def _head_logits_kernel(x_ref, g_ref, b_ref, w_ref, txt_ref, s_ref, o_ref):
    h = _layernorm(x_ref[...], g_ref[...], b_ref[...])
    img = jnp.dot(h.astype(jnp.bfloat16), w_ref[...],
                  preferred_element_type=jnp.float32)                 # (B, O)
    img_n = img * lax.rsqrt(jnp.sum(img * img, axis=-1, keepdims=True) + 1e-12)
    txt = txt_ref[...]
    txt_n = txt * lax.rsqrt(jnp.sum(txt * txt, axis=-1, keepdims=True) + 1e-12)
    logits = lax.dot_general(img_n, txt_n, (((1,), (1,)), ((), ())),
                             preferred_element_type=jnp.float32)      # (B, T)
    o_ref[...] = logits * jnp.exp(s_ref[0, 0])


def head_logits(cls_tok, g, b, proj, txt_feat, logit_scale):
    B, D = cls_tok.shape
    O = proj.shape[1]
    T = txt_feat.shape[0]
    return pl.pallas_call(
        _head_logits_kernel,
        out_shape=jax.ShapeDtypeStruct((B, T), jnp.float32),
        grid=(1,),
        in_specs=[
            pl.BlockSpec((B, D), lambda i: (0, 0)),
            pl.BlockSpec((1, D), lambda i: (0, 0)),
            pl.BlockSpec((1, D), lambda i: (0, 0)),
            pl.BlockSpec((D, O), lambda i: (0, 0)),
            pl.BlockSpec((T, O), lambda i: (0, 0)),
            pl.BlockSpec((1, 1), lambda i: (0, 0)),
        ],
        out_specs=pl.BlockSpec((B, T), lambda i: (0, 0)),
    )(cls_tok, g, b, proj, txt_feat, logit_scale)


# ----------------------------- parameters & forward --------------------------
def init_params(key, input_resolution, patch_size, width, layers, heads, output_dim,
                in_ch=3):
    P = (input_resolution // patch_size) ** 2
    S = P + 1
    K = in_ch * patch_size * patch_size
    D = width
    hd = D // heads
    q_scale = float(hd) ** -0.5
    sc = D ** -0.5
    wdt = jnp.bfloat16                      # matmul weights stored in bf16
    keys = jax.random.split(key, 4 + layers)
    params = {
        "heads": heads,
        "patch_size": patch_size,
        "w_pe": (jax.random.normal(keys[0], (K, D), jnp.float32) * 0.02).astype(wdt),
        "cls": jax.random.normal(keys[1], (1, D), jnp.float32) * sc,
        "pos": jax.random.normal(keys[2], (S, D), jnp.float32) * sc,
        "ln_pre_g": jnp.ones((1, D), jnp.float32),
        "ln_pre_b": jnp.zeros((1, D), jnp.float32),
        "ln_post_g": jnp.ones((1, D), jnp.float32),
        "ln_post_b": jnp.zeros((1, D), jnp.float32),
        "proj": (jax.random.normal(keys[3], (D, output_dim), jnp.float32) * sc).astype(wdt),
        "logit_scale": jnp.ones((1, 1), jnp.float32),   # nn.Parameter(torch.ones([]))
    }
    wqkv_l, wo_l, wfc_l, wpr_l, vec_l = [], [], [], [], []
    for i in range(layers):
        bk = jax.random.split(keys[4 + i], 6)
        # 1/sqrt(head_dim) folded into the Q weight (and its bias) at init.
        wq = jax.random.normal(bk[0], (D, D), jnp.float32) * 0.02 * q_scale
        wk = jax.random.normal(bk[1], (D, D), jnp.float32) * 0.02
        wv = jax.random.normal(bk[2], (D, D), jnp.float32) * 0.02
        wqkv_l.append(jnp.concatenate([wq, wk, wv], axis=1).astype(wdt))   # (D, 3D)
        wo_l.append((jax.random.normal(bk[3], (D, D), jnp.float32) * 0.02).astype(wdt))
        wfc_l.append((jax.random.normal(bk[4], (D, 4 * D), jnp.float32) * 0.02).astype(wdt))
        wpr_l.append((jax.random.normal(bk[5], (4 * D, D), jnp.float32) * 0.02).astype(wdt))
        ln1_g = jnp.ones((1, D), jnp.float32)
        ln1_b = jnp.zeros((1, D), jnp.float32)
        bqkv = jnp.zeros((1, 3 * D), jnp.float32)       # Q part is pre-scaled (it's 0)
        bo = jnp.zeros((1, D), jnp.float32)
        ln2_g = jnp.ones((1, D), jnp.float32)
        ln2_b = jnp.zeros((1, D), jnp.float32)
        bfc = jnp.zeros((1, 4 * D), jnp.float32)
        bpr = jnp.zeros((1, D), jnp.float32)
        vec_l.append(jnp.concatenate(
            [ln1_g, ln1_b, bqkv, bo, ln2_g, ln2_b, bfc, bpr], axis=1))      # (1, 13D)
    params["stack"] = {
        "vecs": jnp.stack(vec_l),          # (L, 1, 13D) packed small vectors
        "wqkv": jnp.stack(wqkv_l),         # (L, D, 3D) bf16
        "wo": jnp.stack(wo_l),             # (L, D, D)  bf16
        "wfc": jnp.stack(wfc_l),           # (L, D, 4D) bf16
        "wpr": jnp.stack(wpr_l),           # (L, 4D, D) bf16
    }
    return params


def vit_student_forward(params, image, text_feature=None):
    """Mirrors VitStudent.forward: features if text_feature is None else scaled logits."""
    B, C, H, W = image.shape
    ps = params["patch_size"]
    gh, gw = H // ps, W // ps
    P, K = gh * gw, C * ps * ps
    S_real = P + 1
    S_pad = ((S_real + 7) // 8) * 8        # sublane-aligned token count

    # im2col patchify (glue); per-patch vector flattened as (C, ph, pw) like conv weights.
    patches = image.reshape(B, C, gh, ps, gw, ps)
    patches = patches.transpose(0, 2, 4, 1, 3, 5).reshape(B, P, K).astype(jnp.bfloat16)

    # Pad the contraction dim K to a lane-dense multiple of 128 (zeros are no-ops).
    w_pe = params["w_pe"]
    K_pad = ((K + 127) // 128) * 128
    if K_pad != K:
        patches = jnp.pad(patches, ((0, 0), (0, 0), (0, K_pad - K)))
        w_pe = jnp.pad(w_pe, ((0, K_pad - K), (0, 0)))

    x = embed(patches, w_pe, params["cls"], params["pos"],
              params["ln_pre_g"], params["ln_pre_b"], S_pad)          # (B, S_pad, D)
    cls_tok = transformer_stack(x, params["stack"], params["heads"],
                                S_real)                               # (B, D)
    if text_feature is None:
        return head_proj(cls_tok, params["ln_post_g"], params["ln_post_b"],
                         params["proj"])                              # (B, output_dim)
    return head_logits(cls_tok, params["ln_post_g"], params["ln_post_b"],
                       params["proj"], text_feature, params["logit_scale"])


if __name__ == "__main__":
    key = jax.random.PRNGKey(0)
    k_par, k_img, k_txt = jax.random.split(key, 3)

    # Small ViT: 16x16 image, 4x4 patches -> 16 patches + cls = 17 tokens (padded to 24).
    B, C = 2, 3
    input_resolution, patch_size = 16, 4
    width, layers, heads, output_dim = 32, 2, 4, 32
    T = 8

    params = init_params(k_par, input_resolution, patch_size, width, layers,
                         heads, output_dim)
    image = jax.random.normal(k_img, (B, C, input_resolution, input_resolution),
                              jnp.float32)
    text_feature = jax.random.normal(k_txt, (T, output_dim), jnp.float32)

    feats = vit_student_forward(params, image)                   # branch: text_feature is None
    logits = vit_student_forward(params, image, text_feature)    # branch: logits * exp(scale)
    jax.block_until_ready((feats, logits))

    assert feats.shape == (B, output_dim) and feats.dtype == jnp.float32
    assert logits.shape == (B, T) and logits.dtype == jnp.float32
    assert bool(jnp.isfinite(feats).all()) and bool(jnp.isfinite(logits).all())
    print("KERNEL_OK")
</pallas_src>

<mosaic_0001>
module attributes {stable_mosaic.version = 11 : i64} {
  func.func @_embed_kernel(%arg0: i32, %arg1: memref<1x16x128xbf16, #tpu.memory_space<vmem>>, %arg2: memref<128x32xbf16, #tpu.memory_space<vmem>>, %arg3: memref<1x32xf32, #tpu.memory_space<vmem>>, %arg4: memref<17x32xf32, #tpu.memory_space<vmem>>, %arg5: memref<1x32xf32, #tpu.memory_space<vmem>>, %arg6: memref<1x32xf32, #tpu.memory_space<vmem>>, %arg7: memref<1x24x32xf32, #tpu.memory_space<vmem>>) attributes {dimension_semantics = [#tpu.dimension_semantics<parallel>], iteration_bounds = array<i64: 2>, scalar_prefetch = 0 : i64, scratch_operands = 0 : i64, tpu.core_type = #tpu.core_type<tc>, window_params = [{transform_indices = @transform_0, window_bounds = array<i64: 1, 16, 128>}, {pipeline_mode = #tpu.pipeline_mode<synchronous>, transform_indices = @transform_1, window_bounds = array<i64: 128, 32>}, {pipeline_mode = #tpu.pipeline_mode<synchronous>, transform_indices = @transform_2, window_bounds = array<i64: 1, 32>}, {pipeline_mode = #tpu.pipeline_mode<synchronous>, transform_indices = @transform_3, window_bounds = array<i64: 17, 32>}, {pipeline_mode = #tpu.pipeline_mode<synchronous>, transform_indices = @transform_4, window_bounds = array<i64: 1, 32>}, {pipeline_mode = #tpu.pipeline_mode<synchronous>, transform_indices = @transform_5, window_bounds = array<i64: 1, 32>}, {transform_indices = @transform_6, window_bounds = array<i64: 1, 24, 32>}]} {
    %c0 = arith.constant 0 : index
    %c0_0 = arith.constant 0 : index
    %c0_1 = arith.constant 0 : index
    %0 = vector.load %arg1[%c0, %c0_0, %c0_1] : memref<1x16x128xbf16, #tpu.memory_space<vmem>>, vector<1x16x128xbf16>
    %1 = vector.shape_cast %0 : vector<1x16x128xbf16> to vector<16x128xbf16>
    %c0_2 = arith.constant 0 : index
    %c0_3 = arith.constant 0 : index
    %2 = vector.load %arg2[%c0_2, %c0_3] : memref<128x32xbf16, #tpu.memory_space<vmem>>, vector<128x32xbf16>
    %cst = arith.constant dense<0.000000e+00> : vector<16x32xf32>
    %3 = tpu.matmul %1, %2, %cst {dimension_numbers = #tpu.dot_dimension_numbers<[1], [0], [0], [1], [0, 0, 1, 1], [], []>} : vector<16x128xbf16>, vector<128x32xbf16>, vector<16x32xf32> -> vector<16x32xf32>
    %c0_4 = arith.constant 0 : index
    %c0_5 = arith.constant 0 : index
    %4 = vector.load %arg5[%c0_4, %c0_5] : memref<1x32xf32, #tpu.memory_space<vmem>>, vector<1x32xf32>
    %c0_6 = arith.constant 0 : index
    %c0_7 = arith.constant 0 : index
    %5 = vector.load %arg6[%c0_6, %c0_7] : memref<1x32xf32, #tpu.memory_space<vmem>>, vector<1x32xf32>
    %c0_8 = arith.constant 0 : index
    %c0_9 = arith.constant 0 : index
    %6 = vector.load %arg3[%c0_8, %c0_9] : memref<1x32xf32, #tpu.memory_space<vmem>>, vector<1x32xf32>
    %c0_10 = arith.constant 0 : index
    %c0_11 = arith.constant 0 : index
    %7 = vector.load %arg4[%c0_10, %c0_11] : memref<17x32xf32, #tpu.memory_space<vmem>>, vector<1x32xf32>
    %8 = arith.addf %6, %7 : vector<1x32xf32>
    %c1 = arith.constant 1 : index
    %c0_12 = arith.constant 0 : index
    %9 = vector.load %arg4[%c1, %c0_12] : memref<17x32xf32, #tpu.memory_space<vmem>>, vector<16x32xf32>
    %10 = arith.addf %3, %9 : vector<16x32xf32>
    %cst_13 = arith.constant dense<0.000000e+00> : vector<1xf32>
    %11 = vector.multi_reduction <add>, %8, %cst_13 [1] : vector<1x32xf32> to vector<1xf32>
    %12 = vector.shape_cast %11 : vector<1xf32> to vector<1x1xf32>
    %cst_14 = arith.constant 3.200000e+01 : f32
    %13 = vector.broadcast %cst_14 : f32 to vector<1x1xf32>
    %14 = arith.divf %12, %13 : vector<1x1xf32>
    %15 = vector.broadcast %14 : vector<1x1xf32> to vector<1x32xf32>
    %16 = arith.subf %8, %15 : vector<1x32xf32>
    %17 = arith.mulf %16, %16 : vector<1x32xf32>
    %cst_15 = arith.constant dense<0.000000e+00> : vector<1xf32>
    %18 = vector.multi_reduction <add>, %17, %cst_15 [1] : vector<1x32xf32> to vector<1xf32>
    %19 = vector.shape_cast %18 : vector<1xf32> to vector<1x1xf32>
    %cst_16 = arith.constant 3.200000e+01 : f32
    %20 = vector.broadcast %cst_16 : f32 to vector<1x1xf32>
    %21 = arith.divf %19, %20 : vector<1x1xf32>
    %cst_17 = arith.constant 9.99999974E-6 : f32
    %22 = vector.broadcast %cst_17 : f32 to vector<1x1xf32>
    %23 = arith.addf %21, %22 : vector<1x1xf32>
    %24 = math.rsqrt %23 : vector<1x1xf32>
    %25 = vector.broadcast %24 : vector<1x1xf32> to vector<1x32xf32>
    %26 = arith.mulf %16, %25 : vector<1x32xf32>
    %27 = arith.mulf %26, %4 : vector<1x32xf32>
    %28 = arith.addf %27, %5 : vector<1x32xf32>
    %c0_18 = arith.constant 0 : index
    %c0_19 = arith.constant 0 : index
    %c0_20 = arith.constant 0 : index
    %29 = vector.load %arg7[%c0_18, %c0_19, %c0_20] : memref<1x24x32xf32, #tpu.memory_space<vmem>>, vector<1x1x32xf32>
    %30 = vector.shape_cast %29 : vector<1x1x32xf32> to vector<1x32xf32>
    %31 = vector.shape_cast %28 : vector<1x32xf32> to vector<1x1x32xf32>
    tpu.vector_store %arg7[%c0_18, %c0_19, %c0_20], %31 {strides = array<i32>} : memref<1x24x32xf32, #tpu.memory_space<vmem>>, vector<1x1x32xf32>,
    %cst_21 = arith.constant dense<0.000000e+00> : vector<16xf32>
    %32 = vector.multi_reduction <add>, %10, %cst_21 [1] : vector<16x32xf32> to vector<16xf32>
    %33 = vector.shape_cast %32 : vector<16xf32> to vector<16x1xf32>
    %cst_22 = arith.constant 3.200000e+01 : f32
    %34 = vector.broadcast %cst_22 : f32 to vector<16x1xf32>
    %35 = arith.divf %33, %34 : vector<16x1xf32>
    %36 = vector.broadcast %35 : vector<16x1xf32> to vector<16x32xf32>
    %37 = arith.subf %10, %36 : vector<16x32xf32>
    %38 = arith.mulf %37, %37 : vector<16x32xf32>
    %cst_23 = arith.constant dense<0.000000e+00> : vector<16xf32>
    %39 = vector.multi_reduction <add>, %38, %cst_23 [1] : vector<16x32xf32> to vector<16xf32>
    %40 = vector.shape_cast %39 : vector<16xf32> to vector<16x1xf32>
    %cst_24 = arith.constant 3.200000e+01 : f32
    %41 = vector.broadcast %cst_24 : f32 to vector<16x1xf32>
    %42 = arith.divf %40, %41 : vector<16x1xf32>
    %cst_25 = arith.constant 9.99999974E-6 : f32
    %43 = vector.broadcast %cst_25 : f32 to vector<16x1xf32>
    %44 = arith.addf %42, %43 : vector<16x1xf32>
    %45 = math.rsqrt %44 : vector<16x1xf32>
    %46 = vector.broadcast %45 : vector<16x1xf32> to vector<16x32xf32>
    %47 = arith.mulf %37, %46 : vector<16x32xf32>
    %48 = vector.broadcast %4 : vector<1x32xf32> to vector<16x32xf32>
    %49 = arith.mulf %47, %48 : vector<16x32xf32>
    %50 = vector.broadcast %5 : vector<1x32xf32> to vector<16x32xf32>
    %51 = arith.addf %49, %50 : vector<16x32xf32>
    %c0_26 = arith.constant 0 : index
    %c1_27 = arith.constant 1 : index
    %c0_28 = arith.constant 0 : index
    %52 = vector.load %arg7[%c0_26, %c1_27, %c0_28] : memref<1x24x32xf32, #tpu.memory_space<vmem>>, vector<1x16x32xf32>
    %53 = vector.shape_cast %52 : vector<1x16x32xf32> to vector<16x32xf32>
    %54 = vector.shape_cast %51 : vector<16x32xf32> to vector<1x16x32xf32>
    tpu.vector_store %arg7[%c0_26, %c1_27, %c0_28], %54 {strides = array<i32>} : memref<1x24x32xf32, #tpu.memory_space<vmem>>, vector<1x16x32xf32>,
    %cst_29 = arith.constant 0.000000e+00 : f32
    %55 = vector.broadcast %cst_29 : f32 to vector<7x32xf32>
    %c0_30 = arith.constant 0 : index
    %c17 = arith.constant 17 : index
    %c0_31 = arith.constant 0 : index
    %56 = vector.load %arg7[%c0_30, %c17, %c0_31] : memref<1x24x32xf32, #tpu.memory_space<vmem>>, vector<1x7x32xf32>
    %57 = vector.shape_cast %56 : vector<1x7x32xf32> to vector<7x32xf32>
    %58 = vector.shape_cast %55 : vector<7x32xf32> to vector<1x7x32xf32>
    tpu.vector_store %arg7[%c0_30, %c17, %c0_31], %58 {strides = array<i32>} : memref<1x24x32xf32, #tpu.memory_space<vmem>>, vector<1x7x32xf32>,
    return
  }
  func.func @transform_0(%arg0: i32) -> (i32, i32, i32) {
    %c0_i32 = arith.constant 0 : i32
    %c0_i32_0 = arith.constant 0 : i32
    %c0_i32_1 = arith.constant 0 : i32
    return %arg0, %c0_i32, %c0_i32_0 : i32, i32, i32
  }
  func.func @transform_1(%arg0: i32) -> (i32, i32) {
    %c0_i32 = arith.constant 0 : i32
    %c0_i32_0 = arith.constant 0 : i32
    %c0_i32_1 = arith.constant 0 : i32
    return %c0_i32, %c0_i32_0 : i32, i32
  }
  func.func @transform_2(%arg0: i32) -> (i32, i32) {
    %c0_i32 = arith.constant 0 : i32
    %c0_i32_0 = arith.constant 0 : i32
    %c0_i32_1 = arith.constant 0 : i32
    return %c0_i32, %c0_i32_0 : i32, i32
  }
  func.func @transform_3(%arg0: i32) -> (i32, i32) {
    %c0_i32 = arith.constant 0 : i32
    %c0_i32_0 = arith.constant 0 : i32
    %c0_i32_1 = arith.constant 0 : i32
    return %c0_i32, %c0_i32_0 : i32, i32
  }
  func.func @transform_4(%arg0: i32) -> (i32, i32) {
    %c0_i32 = arith.constant 0 : i32
    %c0_i32_0 = arith.constant 0 : i32
    %c0_i32_1 = arith.constant 0 : i32
    return %c0_i32, %c0_i32_0 : i32, i32
  }
  func.func @transform_5(%arg0: i32) -> (i32, i32) {
    %c0_i32 = arith.constant 0 : i32
    %c0_i32_0 = arith.constant 0 : i32
    %c0_i32_1 = arith.constant 0 : i32
    return %c0_i32, %c0_i32_0 : i32, i32
  }
  func.func @transform_6(%arg0: i32) -> (i32, i32, i32) {
    %c0_i32 = arith.constant 0 : i32
    %c0_i32_0 = arith.constant 0 : i32
    %c0_i32_1 = arith.constant 0 : i32
    return %arg0, %c0_i32, %c0_i32_0 : i32, i32, i32
  }
}

</mosaic_0001>

<bundles_post_ra>
// kernel: tpu_custom_call.1
= control target key start
LH: loop header
LB: loop body
LE: loop exit
PB: predicated region body
PF: predicated region fallthrough
CT: control target
= control target key end

     0   :  { %11 = vsyncpa [#allocation3], 0  ;;  %s889_s0 = inlined_call_operand.vmem [shape: bf16[2,16,128], index: 0, kind: input, shape index: {}]   ;;  %s890_s1 = inlined_call_operand.vmem [shape: bf16[128,32], index: 1, kind: input, shape index: {}]   ;;  %s891_s2 = inlined_call_operand.vmem [shape: f32[1,32], index: 2, kind: input, shape index: {}]   ;;  %s892_s3 = inlined_call_operand.vmem [shape: f32[17,32], index: 3, kind: input, shape index: {}]   ;;  %s893_s4 = inlined_call_operand.vmem [shape: f32[1,32], index: 4, kind: input, shape index: {}]   ;;  %s894_s5 = inlined_call_operand.vmem [shape: f32[1,32], index: 5, kind: input, shape index: {}]   ;;  %s895_s6 = inlined_call_operand.hbm [shape: f32[2,24,32], index: 6, kind: output, shape index: {}]  }
   0x1   :  { %13 = vsyncpa [#allocation3 + $0x1], 0  ;;  %s722_s21 = smov 0   ;;  %s724_s22 = smov 0  }
   0x2   :  { %s726_s23 = smov 0   ;;  %s728_s24 = smov 0  }
   0x3 LB: > { %s743_s25 = sadd.s32 4294967295, %s680_s24   ;;  %s512_s26 = sadd.s32 4294967294, %s680_s24   ;;  %s680_s24 = sphi %s728_s24, %s901_s24   ;;  %s676_s23 = sphi %s726_s23, %s900_s23   ;;  %s672_s22 = sphi %s724_s22, %s899_s22   ;;  %s668_s21 = sphi %s722_s21, %s898_s21  }
   0x4   : > { %s747_s27 = sadd.s32 1, %s680_s24   ;;  %s157_s28 = sadd.s32 1, %s676_s23 }
   0x5   : > { %s154_s29 = ssub.s32 %s680_s24, %s747_s27  ;;  %p167_p0 = scmp.ne.s32.totalorder %s676_s23, %s672_s22 }
   0x6   : > { %p155_p1 = scmp.eq.s32.totalorder %s154_s29, 0  ;;  %p168_p2 = scmp.eq.s32.totalorder %s743_s25, 1 }
   0x7   : > { %p173_p3 = scmp.ne.s32.totalorder %s672_s22, %s668_s21  ;;  %p174_p4 = scmp.eq.s32.totalorder %s512_s26, 1 }
   0x8   : > { %s758_s30 = scalar_select %p155_p1, %s676_s23, %s157_s28  }
   0x9   : > { %p760_p5 = por %p168_p2, %p167_p0  ;;  %p764_p6 = por %p174_p4, %p173_p3 }
   0xa   : > { %p515_p7 = scmp.ge.s32.totalorder %s680_s24, 1  ;;  %p215_p8 = scmp.lt.s32.totalorder %s680_s24, 3 }
   0xc   : > { %p216_p9 = pnand %p515_p7, %p215_p8 }
   0xd   : > { %p245_p10 = scmp.lt.s32.totalorder (!%p216_p9), %s743_s25, 1  ;;  %s561_s15 = smul.u32 (!%p216_p9), 384, %s743_s25 }
   0xe   : > { %219 = sbr.rel (%p216_p9) target bundleno = 573 (0x23d), region = 44  ;;  %s684_s28 = smov (!%p216_p9), [#allocation2]  }
   0xf   : > { %s842_s20 = scalar_lea.hbm (!%p216_p9), %s895_s6, %s561_s15  ;;  %s624_s29 = sshll.u32 (!%p216_p9), %s684_s28, 4  ;;  %s625_s29 = int_to_ptr.vmem [resolvable:$false] %s624_s29 }
  0x10   : > { %s626_s9 = scalar_lea.vmem (!%p216_p9), %s625_s29, 768 }
  0x13   : > { %v605_v0 = vld [vmem:[%s890_s1 + $0x38] sm:$0xff]   ;;  %v682_v1 = vmov 0.0   ;;  %v606_v2 = vld [vmem:[%s890_s1 + $0x30] sm:$0xff]   ;;  %vm683_vm0 = vmmov 0   ;;  %s246_s13 = scalar_select %p245_p10, %s743_s25, 1  ;;  %v607_v3 = vld [vmem:[%s890_s1 + $0x28] sm:$0xff]   ;;  %v417_v52 = vlaneseq }
  0x14   : > { %540 = vmatprep.subr.bf16.mxu0 %v682_v1  ;;  %556 = vmatprep.mubr.msk.bf16.mxu0 %vm683_vm0, %v682_v1  ;;  %v271_v4 = vld [vmem:[%s891_s2] sm:$0x1]  ;;  %vm371_vm1 = vcmask 253952   ;;  %v609_v9 = vld [vmem:[%s890_s1 + $0x18] sm:$0xff]   ;;  %v610_v10 = vld [vmem:[%s890_s1 + $0x10] sm:$0xff]   ;;  %vm389_vm2 = vcmask 261120  }
  0x15   : > { %541 = vmatpush3.bf16.msra.mxu0 %v605_v0  ;;  %s530_s16 = sshll.u32 %s246_s13, 3  ;;  %v272_v5 = vld [vmem:[%s892_s3] sm:$0x1]  ;;  %v611_v11 = vld [vmem:[%s890_s1 + $0x8] sm:$0xff]   ;;  %vm434_vm3 = vcmask 260096   ;;  %v418_v55 = vshrl.u32 %v417_v52, 7 }
  0x16   : > { %542 = vmatprep.subr.bf16.mxu0 %v682_v1  ;;  %s249_s19 = scalar_lea.vmem %s889_s0, %s530_s16  ;;  %v608_v6 = vld [vmem:[%s890_s1 + $0x20] sm:$0xff]   ;;  %v273_v7 = vadd.f32 %v272_v5, %v271_v4  ;;  %v275_v21 = vld [vmem:[%s892_s3 + $0x9] sm:$0xff] }
  0x17   : > { %v612_v12 = vld [vmem:[%s890_s1] sm:$0xff]   ;;  %v419_v56 = vsub.s32 0, %v418_v55 }
  0x18   : > { %v372_v8 = vsel %vm371_vm1, %v273_v7, 0.0  ;;  %v613_v13 = vld [vmem:[%s249_s19] sm:$0xff]   ;;  %s242_s19 = sand.u32 1, %s672_s22  }
  0x19   : > { %543 = vmatpush3.bf16.msra.mxu0 %v606_v2  ;;  %373 = vadd.xlane.f32.xlu0 %v372_v8  ;;  %v274_v16 = vld [vmem:[%s892_s3 + $0x1] sm:$0xff]  ;;  %v269_v43 = vld [vmem:[%s893_s4] sm:$0x1]  ;;  %s560_s11 = smul.u32 24, %s242_s19  ;;  %s849_s25 = scalar_lea.sflag [#allocation3], %s242_s19 }
  0x1a   : > { %544 = vmatprep.subr.bf16.mxu0 %v682_v1  ;;  %v270_v45 = vld [vmem:[%s894_s5] sm:$0x1]  ;;  %v420_v57 = vrot.slane %v269_v43, %v419_v56 }
  0x1b   : > { %s244_s14 = scalar_lea.vmem [#allocation2], %s560_s11  ;;  %v428_v59 = vrot.slane %v270_v45, %v419_v56 }
  0x1c   : > { %435 = vst.msk [vmem:[%s244_s14 + $0x11] sm:$0x7f] %vm434_vm3, %v682_v1  ;;  %s450_s16 = sshll.u32 %s244_s14, 4  ;;  %s844_s16 = int_to_ptr.vmem [resolvable:$true] %s450_s16 }
  0x1d   : > { %545 = vmatpush3.bf16.msra.mxu0 %v607_v3  ;;  %s620_s26 = scalar_lea.vmem %s844_s16, 384  ;;  %p627_p0 = scmp.lt.s32.totalorder %s844_s16, %s625_s29 }
  0x1e   : > { %546 = vmatprep.subr.bf16.mxu0 %v682_v1  ;;  %p621_p11 = scmp.ne.s32.totalorder %s844_s16, %s620_s26  ;;  %p628_p1 = scmp.lt.s32.totalorder %s626_s9, %s620_s26 }
  0x20   : > { %p622_p12 = pnand %p621_p11, %p760_p5  ;;  %p629_p2 = por %p628_p1, %p627_p0 }
  0x21   : > { %547 = vmatpush3.bf16.msra.mxu0 %v608_v6 }
  0x22   : > { %548 = vmatprep.subr.bf16.mxu0 %v682_v1  ;;  %p623_p13 = pneg %p622_p12 }
  0x24   : > { %p630_p3 = pnand %p629_p2, %p623_p13 }
  0x25   : > { %549 = vmatpush3.bf16.msra.mxu0 %v609_v9 }
  0x26   : > { %550 = vmatprep.subr.bf16.mxu0 %v682_v1 }
  0x29   : > { %551 = vmatpush3.bf16.msra.mxu0 %v610_v10 }
  0x2a   : > { %552 = vmatprep.subr.bf16.mxu0 %v682_v1 }
  0x2d   : > { %553 = vmatpush3.bf16.msra.mxu0 %v611_v11 }
  0x2e   : > { %554 = vmatprep.subr.bf16.mxu0 %v682_v1 }
  0x31   : > { %555 = vmatpush3.bf16.msra.mxu0 %v612_v12 }
  0x34   : > { %557 = vmatmul.mubr.bf16.vlgmr.msra.gmra.mxu0 %v613_v13 }
  0xa2   : > { %v374_v14 = vpop.xlane.xlu0 %373 }
  0xa3   : > { %v376_v15 = vmul.f32 0.03125, %v374_v14 }
  0xa5   : > { %v377_v19 = vsub.f32 %v273_v7, %v376_v15 }
  0xa7   : > { %v378_v25 = vmul.f32 %v377_v19, %v377_v19 }
  0xa9   : > { %v379_v28 = vsel %vm371_vm1, %v378_v25, 0.0 }
  0xf4   : > { %v364_v17 = vpop.f32.mrf.mxu0 }
  0xf5   : > { %v365_v18 = vadd.f32 %v364_v17, %v274_v16 }
  0xf6   : > { %v558_v20 = vpop.f32.mrf.mxu0 }
  0xf7   : > { %v390_v22 = vsel %vm389_vm2, %v365_v18, 0.0 }
  0xf8   : > { %391 = vadd.xlane.f32.xlu0 %v390_v22  ;;  %v367_v23 = vpop.f32.mrf.mxu0 }
  0xf9   : > { %v368_v24 = vadd.f32 %v367_v23, %v275_v21 }
  0xfa   : > { %v559_v26 = vpop.f32.mrf.mxu0 }
  0xfb   : > { %v393_v27 = vsel %vm389_vm2, %v368_v24, 0.0 }
  0xfc   : > { %394 = vadd.xlane.f32.xlu1 %v393_v27 }
 0x100   : > { %380 = vadd.xlane.f32.xlu1 %v379_v28 }
 0x181   : > { %v392_v29 = vpop.xlane.xlu0 %391 }
 0x182   : > { %v396_v30 = vmul.f32 0.03125, %v392_v29 }
 0x184   : > { %v398_v31 = vsub.f32 %v365_v18, %v396_v30 }
 0x185   : > { %v395_v32 = vpop.xlane.xlu1 %394 }
 0x186   : > { %v397_v33 = vmul.f32 0.03125, %v395_v32  ;;  %v400_v34 = vmul.f32 %v398_v31, %v398_v31 }
 0x188   : > { %v399_v35 = vsub.f32 %v368_v24, %v397_v33  ;;  %v402_v36 = vsel %vm389_vm2, %v400_v34, 0.0 }
 0x189   : > { %403 = vadd.xlane.f32.xlu0 %v402_v36  ;;  %v381_v37 = vpop.xlane.xlu1 %380 }
 0x18a   : > { %v382_v38 = vmul.f32 0.03125, %v381_v37  ;;  %v401_v39 = vmul.f32 %v399_v35, %v399_v35 }
 0x18c   : > { %v383_v40 = vadd.f32 1e-05, %v382_v38  ;;  %v405_v41 = vsel %vm389_vm2, %v401_v39, 0.0 }
 0x18d   : > { %406 = vadd.xlane.f32.xlu1 %v405_v41 }
 0x18e   : > { %614 = vrsqrt.f32 %v383_v40 }
 0x19b   : > { %v615_v42 = vpop.eup %614 }
 0x19c   : > { %v385_v44 = vmul.f32 %v615_v42, %v377_v19 }
 0x19e   : > { %v386_v46 = vmul.f32 %v385_v44, %v269_v43 }
 0x1a0   : > { %v387_v47 = vadd.f32 %v386_v46, %v270_v45 }
 0x1a2   : > { %388 = vst.msk [vmem:[%s244_s14] sm:$0x1] %vm371_vm1, %v387_v47 }
 0x212   : > { %v404_v48 = vpop.xlane.xlu0 %403 }
 0x213   : > { %v408_v49 = vmul.f32 0.03125, %v404_v48 }
 0x215   : > { %v410_v50 = vadd.f32 1e-05, %v408_v49 }
 0x216   : > { %v407_v51 = vpop.xlane.xlu1 %406 }
 0x217   : > { %616 = vrsqrt.f32 %v410_v50  ;;  %v409_v53 = vmul.f32 0.03125, %v407_v51 }
 0x219   : > { %v411_v54 = vadd.f32 1e-05, %v409_v53 }
 0x21b   : > { %618 = vrsqrt.f32 %v411_v54 }
 0x224   : > { %v617_v58 = vpop.eup %616 }
 0x225   : > { %v414_v60 = vmul.f32 %v617_v58, %v398_v31 }
 0x227   : > { %v422_v61 = vmul.f32 %v420_v57, %v414_v60 }
 0x228   : > { %v619_v62 = vpop.eup %618 }
 0x229   : > { %v430_v63 = vadd.f32 %v428_v59, %v422_v61  ;;  %v415_v0 = vmul.f32 %v619_v62, %v399_v35 }
 0x22b   : > { %v423_v1 = vmul.f32 %v420_v57, %v415_v0  ;;  %432 = vst.msk [vmem:[%s244_s14 + $0x1] sm:$0xff] %vm389_vm2, %v430_v63 }
 0x22d   : > { %v431_v2 = vadd.f32 %v428_v59, %v423_v1 }
 0x22f   : > { %433 = vst.msk [vmem:[%s244_s14 + $0x9] sm:$0xff] %vm389_vm2, %v431_v2 }
 0x230   : > { %633 = shalt.err (!%p630_p3)
}
 0x231   : > { %s634_s19 = scalar_lea.hbm %s842_s20, 384  ;;  %s638_s12 = scalar_lea.hbm %s895_s6, 768 }
 0x232   : > { %p635_p4 = scmp.ne.s32.totalorder %s842_s20, %s634_s19  ;;  %p639_p9 = scmp.lt.s32.totalorder %s842_s20, %s895_s6 }
 0x233   : > { %p640_p10 = scmp.lt.s32.totalorder %s638_s12, %s634_s19 }
 0x234   : > { %p636_p7 = pnand %p635_p4, %p760_p5 }
 0x235   : > { %p641_p11 = por %p640_p10, %p639_p9 }
 0x236   : > { %p637_p8 = pneg %p636_p7 }
 0x238   : > { %p642_p12 = pnand %p641_p11, %p637_p8 }
 0x23a   : > { %645 = shalt.err (!%p642_p12)
}
 0x23b   : > { %s685_s15 = smov 128   ;;  %s686_s17 = smov 8  }
 0x23c   : > { %562 = dma.vmem_to_hbm [thread:$0]  (%p760_p5), %s844_s16, 384, %s842_s20, %s849_s25, %s685_s15, %s685_s15, %s686_s17  }
 0x23d PF: > { %p568_p13 = scmp.ge.s32.totalorder %s680_s24, 2  ;;  %s465_s18 = sand.u32 1, %s668_s21  }
 0x23e   : > { %s466_s26 = scalar_lea.sflag [#allocation3], %s465_s18 }
 0x23f   : > { %p565_p0 = pnand %p568_p13, %p764_p6 }
 0x241   : > { %p566_p1 = pneg %p565_p0 }
 0x243   : > { %663 = dma.done.wait (%p566_p1), %s466_s26, 384  }
 0x244   : > { %665 = vsyncadd (%p566_p1), %s466_s26, 4294966912  ;;  %p16_p2 = scmp.ge.s32.totalorder %s747_s27, 4   ;;  %s898_s21 = smov %s672_s22 }
 0x245   : > { %s899_s22 = smov %s676_s23  ;;  %s900_s23 = smov %s758_s30 }
 0x246   : > { %s901_s24 = smov %s747_s27  ;;  %18 = sbr.rel (!%p16_p2) target bundleno = 3 (0x3), region = 79 }
 0x24b   :  { %471 = vsyncpa [#allocation3], 1 }
 0x24c   :  { %473 = vsyncpa [#allocation3 + $0x1], 1 }

</bundles_post_ra>
